<compile_context>
chip_gen: v7x
topology: tpu7x:2x2x1
jax: 0.10.0
libtpu: 0.0.40
codegen_flags: <defaults>
</compile_context>

<pallas_src>
import functools
import math
import numpy as np
import jax
import jax.numpy as jnp
from jax import lax
from jax.experimental import pallas as pl
from jax.experimental.pallas import tpu as pltpu  # noqa: F401  (TPU backend assumed)

_OUT_LANES = 128  # lane width of the merged output tile


def _qmix_kernel(act_ref, params_ref, qj_ref, out_ref, *, n_actions):
    B, A = act_ref.shape
    N = n_actions
    C = A * N                      # flattened agent/action axis (matmul K)
    W = params_ref.shape[1]        # packed-slab lane width, >= max(H, C)

    acts = act_ref[...]                                          # [B, A] int32

    # ---- flattened joint-action one-hot: onehot[b, a*N+n] = (acts[b,a] == n) ----
    # A independent lane-compares on a 2-D iota, summed with a balanced tree
    # (no serial VPU add chain, no 3-D intermediates).
    col = lax.broadcasted_iota(jnp.int32, (B, C), 1)             # [B, C]
    terms = [(col == (acts[:, a:a + 1] + a * N)).astype(jnp.float32)
             for a in range(A)]
    while len(terms) > 1:
        nxt = [terms[i] + terms[i + 1] for i in range(0, len(terms) - 1, 2)]
        if len(terms) % 2:
            nxt.append(terms[-1])
        terms = nxt
    onehot = terms[0]                                            # [B, C]

    # ---- fuse the gather: scale the one-hot by flattened individual_qs ----
    iq_row = params_ref[A + 3:A + 4, :]                          # [1, W]
    q1h = onehot * iq_row[:, :C]                                 # [B, C] (VPU)

    # ---- W1_exp[c, :] = |w1[c // N, :]| via A sublane-broadcast loads ----
    blocks = [jnp.broadcast_to(jnp.abs(params_ref[a:a + 1, :]), (N, W))
              for a in range(A)]
    w1_exp = jnp.concatenate(blocks, axis=0)                     # [C, W]

    # ---- hidden = ELU(q1h @ W1_exp + b1): single MXU contraction, K = A*N ----
    b1_row = params_ref[A:A + 1, :]                              # [1, W]
    h_lin = jnp.dot(q1h, w1_exp,
                    preferred_element_type=jnp.float32) + b1_row  # [B, W]
    # ELU (alpha=1); exp-1 kept instead of expm1 for guaranteed Mosaic lowering
    # (abs diff vs expm1 is ~1e-8 at these magnitudes).
    hidden = jnp.where(h_lin > 0, h_lin, jnp.exp(h_lin) - 1.0)   # [B, W]

    # ---- q_tot = hidden @ |w2| + b2 : VPU multiply + lane reduce (skip MXU) ----
    w2_abs = jnp.abs(params_ref[A + 1:A + 2, :])                 # [1, W]
    b2_11 = params_ref[A + 2:A + 3, 0:1]                         # [1, 1]
    q_col = jnp.sum(hidden * w2_abs, axis=1, keepdims=True) + b2_11   # [B, 1]

    # ---- loss = mean((q_tot - q_joint)^2), kept 2-D throughout ----
    diff = q_col - qj_ref[...]                                   # [B, 1]
    loss_11 = jnp.sum(diff * diff, axis=0, keepdims=True) * (1.0 / B)  # [1, 1]

    # ---- single merged output tile: lane 0 = q_tot, element [0,1] = loss ----
    lane = lax.broadcasted_iota(jnp.int32, out_ref.shape, 1)
    sub = lax.broadcasted_iota(jnp.int32, out_ref.shape, 0)
    out_ref[...] = (jnp.where(lane == 0, q_col, 0.0)
                    + jnp.where((lane == 1) & (sub == 0), loss_11, 0.0))


def q_factorization_qmix(batch_action, q_joint, individual_qs, w1, b1, w2, b2):
    """batch_action: [B, A, 1] int32, q_joint: [B, 1] f32.  Returns (q_tot, loss)."""
    B, A, _ = batch_action.shape
    N = individual_qs.shape[2]
    H = w1.shape[1]
    C = A * N
    W = max(H, C)

    # Wrapper-side LAYOUT plumbing only (reshape / zero-pad / concat, no arithmetic):
    acts2d = batch_action[:, :, 0].astype(jnp.int32)             # [B, A]

    def row_pad(x):
        return jnp.pad(x, ((0, 0), (0, W - x.shape[1])))

    params = jnp.concatenate(
        [row_pad(w1),                                # rows 0..A-1 : w1        [A, W]
         row_pad(b1),                                # row  A      : b1        [1, W]
         row_pad(w2.reshape(1, H)),                  # row  A+1    : w2 (row)  [1, W]
         row_pad(b2),                                # row  A+2    : b2 @ lane0[1, W]
         row_pad(individual_qs.reshape(1, C))],      # row  A+3    : iq (flat) [1, W]
        axis=0).astype(jnp.float32)                  # [A+4, W]  -> ONE input DMA

    flops = 2 * B * C * W + 6 * B * W + B * C        # dominated by the single matmul
    bytes_accessed = (acts2d.size * 4 + params.size * 4 + q_joint.size * 4
                      + B * _OUT_LANES * 4)

    out = pl.pallas_call(
        functools.partial(_qmix_kernel, n_actions=N),
        out_shape=jax.ShapeDtypeStruct((B, _OUT_LANES), jnp.float32),
        cost_estimate=pl.CostEstimate(flops=flops,
                                      transcendentals=B * W,
                                      bytes_accessed=bytes_accessed),
    )(acts2d, params, q_joint)

    q_tot = out[:, 0:1]                              # [B, 1]
    loss = out[0, 1]                                 # scalar
    return q_tot, loss


def _reference(batch_action, q_joint, individual_qs, w1, b1, w2, b2):
    sel = jnp.take_along_axis(
        jnp.broadcast_to(individual_qs,
                         (batch_action.shape[0],) + individual_qs.shape[1:]),
        batch_action, axis=2)[:, :, 0]
    h = jax.nn.elu(sel @ jnp.abs(w1) + b1)
    q_tot = h @ jnp.abs(w2) + b2
    loss = jnp.mean((q_tot - q_joint) ** 2)
    return q_tot, loss


if __name__ == "__main__":
    # Small shapes consistent with the module's forward.
    B, AGENTS, ACTIONS, HIDDEN = 8, 4, 8, 32

    key = jax.random.PRNGKey(0)
    k_iq, k_w1, k_b1, k_w2, k_b2, k_act, k_qj = jax.random.split(key, 7)

    # Deterministic parameter init (shapes from __init__; kaiming-uniform-ish bound).
    bound = 1.0 / math.sqrt(ACTIONS)
    individual_qs = jax.random.uniform(k_iq, (1, AGENTS, ACTIONS), jnp.float32,
                                       -bound, bound)
    w1 = jax.random.normal(k_w1, (AGENTS, HIDDEN), jnp.float32)
    b1 = jax.random.normal(k_b1, (1, HIDDEN), jnp.float32)
    w2 = jax.random.normal(k_w2, (HIDDEN, 1), jnp.float32)
    b2 = jax.random.normal(k_b2, (1, 1), jnp.float32)

    batch_action = jax.random.randint(k_act, (B, AGENTS, 1), 0, ACTIONS, jnp.int32)
    q_joint = jax.random.normal(k_qj, (B, 1), jnp.float32)

    q_tot, loss = q_factorization_qmix(batch_action, q_joint,
                                       individual_qs, w1, b1, w2, b2)
    jax.block_until_ready((q_tot, loss))

    q_ref, l_ref = _reference(batch_action, q_joint, individual_qs, w1, b1, w2, b2)
    np.testing.assert_allclose(np.asarray(q_tot), np.asarray(q_ref), rtol=1e-5, atol=1e-5)
    np.testing.assert_allclose(np.asarray(loss), np.asarray(l_ref), rtol=1e-5, atol=1e-5)

    # TODO(synk): other algo branches ('vdn', 'weighted_vdn', 'qplex', qtran losses)
    # follow the same one-hot + matmul + reduce structure and are omitted here.
    print("KERNEL_OK")
</pallas_src>

<mosaic_0001>
module attributes {stable_mosaic.version = 11 : i64} {
  func.func @_qmix_kernel(%arg0: memref<8x4xi32, #tpu.memory_space<vmem>>, %arg1: memref<8x32xf32, #tpu.memory_space<vmem>>, %arg2: memref<8x1xf32, #tpu.memory_space<vmem>>, %arg3: memref<8x128xf32, #tpu.memory_space<vmem>>) attributes {dimension_semantics = [], scalar_prefetch = 0 : i64, scratch_operands = 0 : i64, tpu.core_type = #tpu.core_type<tc>} {
    %c0 = arith.constant 0 : index
    %c0_0 = arith.constant 0 : index
    %0 = vector.load %arg0[%c0, %c0_0] : memref<8x4xi32, #tpu.memory_space<vmem>>, vector<8x4xi32>
    %1 = tpu.iota {dimensions = array<i32: 1>} : vector<8x32xi32>
    %2 = vector.extract_strided_slice %0 {offsets = [0, 0], sizes = [8, 1], strides = [1, 1]} : vector<8x4xi32> to vector<8x1xi32>
    %c0_i32 = arith.constant 0 : i32
    %3 = vector.broadcast %c0_i32 : i32 to vector<8x1xi32>
    %4 = arith.addi %2, %3 : vector<8x1xi32>
    %5 = vector.broadcast %4 : vector<8x1xi32> to vector<8x32xi32>
    %6 = arith.cmpi eq, %1, %5 : vector<8x32xi32>
    %7 = arith.extui %6 : vector<8x32xi1> to vector<8x32xi32>
    %8 = arith.sitofp %7 : vector<8x32xi32> to vector<8x32xf32>
    %9 = vector.extract_strided_slice %0 {offsets = [0, 1], sizes = [8, 1], strides = [1, 1]} : vector<8x4xi32> to vector<8x1xi32>
    %c8_i32 = arith.constant 8 : i32
    %10 = vector.broadcast %c8_i32 : i32 to vector<8x1xi32>
    %11 = arith.addi %9, %10 : vector<8x1xi32>
    %12 = vector.broadcast %11 : vector<8x1xi32> to vector<8x32xi32>
    %13 = arith.cmpi eq, %1, %12 : vector<8x32xi32>
    %14 = arith.extui %13 : vector<8x32xi1> to vector<8x32xi32>
    %15 = arith.sitofp %14 : vector<8x32xi32> to vector<8x32xf32>
    %16 = vector.extract_strided_slice %0 {offsets = [0, 2], sizes = [8, 1], strides = [1, 1]} : vector<8x4xi32> to vector<8x1xi32>
    %c16_i32 = arith.constant 16 : i32
    %17 = vector.broadcast %c16_i32 : i32 to vector<8x1xi32>
    %18 = arith.addi %16, %17 : vector<8x1xi32>
    %19 = vector.broadcast %18 : vector<8x1xi32> to vector<8x32xi32>
    %20 = arith.cmpi eq, %1, %19 : vector<8x32xi32>
    %21 = arith.extui %20 : vector<8x32xi1> to vector<8x32xi32>
    %22 = arith.sitofp %21 : vector<8x32xi32> to vector<8x32xf32>
    %23 = vector.extract_strided_slice %0 {offsets = [0, 3], sizes = [8, 1], strides = [1, 1]} : vector<8x4xi32> to vector<8x1xi32>
    %c24_i32 = arith.constant 24 : i32
    %24 = vector.broadcast %c24_i32 : i32 to vector<8x1xi32>
    %25 = arith.addi %23, %24 : vector<8x1xi32>
    %26 = vector.broadcast %25 : vector<8x1xi32> to vector<8x32xi32>
    %27 = arith.cmpi eq, %1, %26 : vector<8x32xi32>
    %28 = arith.extui %27 : vector<8x32xi1> to vector<8x32xi32>
    %29 = arith.sitofp %28 : vector<8x32xi32> to vector<8x32xf32>
    %30 = arith.addf %8, %15 : vector<8x32xf32>
    %31 = arith.addf %22, %29 : vector<8x32xf32>
    %32 = arith.addf %30, %31 : vector<8x32xf32>
    %c7 = arith.constant 7 : index
    %c0_1 = arith.constant 0 : index
    %33 = vector.load %arg1[%c7, %c0_1] : memref<8x32xf32, #tpu.memory_space<vmem>>, vector<1x32xf32>
    %34 = vector.broadcast %33 : vector<1x32xf32> to vector<8x32xf32>
    %35 = arith.mulf %32, %34 : vector<8x32xf32>
    %c0_2 = arith.constant 0 : index
    %c0_3 = arith.constant 0 : index
    %36 = vector.load %arg1[%c0_2, %c0_3] : memref<8x32xf32, #tpu.memory_space<vmem>>, vector<1x32xf32>
    %37 = math.absf %36 : vector<1x32xf32>
    %38 = vector.shape_cast %37 : vector<1x32xf32> to vector<1x32xf32>
    %39 = vector.broadcast %38 : vector<1x32xf32> to vector<8x32xf32>
    %c1 = arith.constant 1 : index
    %c0_4 = arith.constant 0 : index
    %40 = vector.load %arg1[%c1, %c0_4] : memref<8x32xf32, #tpu.memory_space<vmem>>, vector<1x32xf32>
    %41 = math.absf %40 : vector<1x32xf32>
    %42 = vector.shape_cast %41 : vector<1x32xf32> to vector<1x32xf32>
    %43 = vector.broadcast %42 : vector<1x32xf32> to vector<8x32xf32>
    %c2 = arith.constant 2 : index
    %c0_5 = arith.constant 0 : index
    %44 = vector.load %arg1[%c2, %c0_5] : memref<8x32xf32, #tpu.memory_space<vmem>>, vector<1x32xf32>
    %45 = math.absf %44 : vector<1x32xf32>
    %46 = vector.shape_cast %45 : vector<1x32xf32> to vector<1x32xf32>
    %47 = vector.broadcast %46 : vector<1x32xf32> to vector<8x32xf32>
    %c3 = arith.constant 3 : index
    %c0_6 = arith.constant 0 : index
    %48 = vector.load %arg1[%c3, %c0_6] : memref<8x32xf32, #tpu.memory_space<vmem>>, vector<1x32xf32>
    %49 = math.absf %48 : vector<1x32xf32>
    %50 = vector.shape_cast %49 : vector<1x32xf32> to vector<1x32xf32>
    %51 = vector.broadcast %50 : vector<1x32xf32> to vector<8x32xf32>
    %52 = tpu.concatenate %39, %43, %47, %51 in 0 : vector<8x32xf32>, vector<8x32xf32>, vector<8x32xf32>, vector<8x32xf32> -> vector<32x32xf32>
    %c4 = arith.constant 4 : index
    %c0_7 = arith.constant 0 : index
    %53 = vector.load %arg1[%c4, %c0_7] : memref<8x32xf32, #tpu.memory_space<vmem>>, vector<1x32xf32>
    %cst = arith.constant dense<0.000000e+00> : vector<8x32xf32>
    %54 = tpu.matmul %35, %52, %cst {dimension_numbers = #tpu.dot_dimension_numbers<[1], [0], [0], [1], [0, 0, 1, 1], [], []>} : vector<8x32xf32>, vector<32x32xf32>, vector<8x32xf32> -> vector<8x32xf32>
    %55 = vector.broadcast %53 : vector<1x32xf32> to vector<8x32xf32>
    %56 = arith.addf %54, %55 : vector<8x32xf32>
    %cst_8 = arith.constant 0.000000e+00 : f32
    %57 = vector.broadcast %cst_8 : f32 to vector<8x32xf32>
    %58 = arith.cmpf ogt, %56, %57 : vector<8x32xf32>
    %59 = math.exp %56 : vector<8x32xf32>
    %cst_9 = arith.constant 1.000000e+00 : f32
    %60 = vector.broadcast %cst_9 : f32 to vector<8x32xf32>
    %61 = arith.subf %59, %60 : vector<8x32xf32>
    %62 = arith.select %58, %56, %61 : vector<8x32xi1>, vector<8x32xf32>
    %c5 = arith.constant 5 : index
    %c0_10 = arith.constant 0 : index
    %63 = vector.load %arg1[%c5, %c0_10] : memref<8x32xf32, #tpu.memory_space<vmem>>, vector<1x32xf32>
    %64 = math.absf %63 : vector<1x32xf32>
    %c6 = arith.constant 6 : index
    %c0_11 = arith.constant 0 : index
    %65 = vector.load %arg1[%c6, %c0_11] : memref<8x32xf32, #tpu.memory_space<vmem>>, vector<1x1xf32>
    %66 = vector.broadcast %64 : vector<1x32xf32> to vector<8x32xf32>
    %67 = arith.mulf %62, %66 : vector<8x32xf32>
    %cst_12 = arith.constant dense<0.000000e+00> : vector<8xf32>
    %68 = vector.multi_reduction <add>, %67, %cst_12 [1] : vector<8x32xf32> to vector<8xf32>
    %69 = vector.shape_cast %68 : vector<8xf32> to vector<8x1xf32>
    %70 = vector.broadcast %65 : vector<1x1xf32> to vector<8x1xf32>
    %71 = arith.addf %69, %70 : vector<8x1xf32>
    %c0_13 = arith.constant 0 : index
    %c0_14 = arith.constant 0 : index
    %72 = vector.load %arg2[%c0_13, %c0_14] : memref<8x1xf32, #tpu.memory_space<vmem>>, vector<8x1xf32>
    %73 = arith.subf %71, %72 : vector<8x1xf32>
    %74 = arith.mulf %73, %73 : vector<8x1xf32>
    %cst_15 = arith.constant dense<0.000000e+00> : vector<1xf32>
    %75 = vector.multi_reduction <add>, %74, %cst_15 [0] : vector<8x1xf32> to vector<1xf32>
    %76 = vector.shape_cast %75 : vector<1xf32> to vector<1x1xf32>
    %cst_16 = arith.constant 1.250000e-01 : f32
    %77 = vector.broadcast %cst_16 : f32 to vector<1x1xf32>
    %78 = arith.mulf %76, %77 : vector<1x1xf32>
    %79 = tpu.iota {dimensions = array<i32: 1>} : vector<8x128xi32>
    %80 = tpu.iota {dimensions = array<i32: 0>} : vector<8x128xi32>
    %c0_i32_17 = arith.constant 0 : i32
    %81 = vector.broadcast %c0_i32_17 : i32 to vector<8x128xi32>
    %82 = arith.cmpi eq, %79, %81 : vector<8x128xi32>
    %cst_18 = arith.constant 0.000000e+00 : f32
    %83 = vector.shape_cast %71 : vector<8x1xf32> to vector<8x1xf32>
    %84 = vector.broadcast %83 : vector<8x1xf32> to vector<8x128xf32>
    %85 = vector.broadcast %cst_18 : f32 to vector<8x128xf32>
    %86 = arith.select %82, %84, %85 : vector<8x128xi1>, vector<8x128xf32>
    %c1_i32 = arith.constant 1 : i32
    %87 = vector.broadcast %c1_i32 : i32 to vector<8x128xi32>
    %88 = arith.cmpi eq, %79, %87 : vector<8x128xi32>
    %c0_i32_19 = arith.constant 0 : i32
    %89 = vector.broadcast %c0_i32_19 : i32 to vector<8x128xi32>
    %90 = arith.cmpi eq, %80, %89 : vector<8x128xi32>
    %91 = arith.andi %88, %90 : vector<8x128xi1>
    %cst_20 = arith.constant 0.000000e+00 : f32
    %92 = vector.shape_cast %78 : vector<1x1xf32> to vector<1x1xf32>
    %93 = vector.broadcast %92 : vector<1x1xf32> to vector<8x128xf32>
    %94 = vector.broadcast %cst_20 : f32 to vector<8x128xf32>
    %95 = arith.select %91, %93, %94 : vector<8x128xi1>, vector<8x128xf32>
    %96 = arith.addf %86, %95 : vector<8x128xf32>
    %c0_21 = arith.constant 0 : index
    %c0_22 = arith.constant 0 : index
    %97 = vector.load %arg3[%c0_21, %c0_22] : memref<8x128xf32, #tpu.memory_space<vmem>>, vector<8x128xf32>
    tpu.vector_store %arg3[%c0_21, %c0_22], %96 {strides = array<i32>} : memref<8x128xf32, #tpu.memory_space<vmem>>, vector<8x128xf32>,
    return
  }
}

</mosaic_0001>

<bundles_post_ra>
// kernel: tpu_custom_call.1
= control target key start
LH: loop header
LB: loop body
LE: loop exit
PB: predicated region body
PF: predicated region fallthrough
CT: control target
= control target key end

     0   :  { %v294_v1 = vmov 0   ;;  %v295_v2 = vmov 2   ;;  %v16_v4 = vlaneseq  ;;  %s370_s0 = inlined_call_operand.vmem [shape: s32[8,4], index: 0, kind: input, shape index: {}]   ;;  %s371_s1 = inlined_call_operand.vmem [shape: f32[8,32], index: 1, kind: input, shape index: {}]   ;;  %s372_s2 = inlined_call_operand.vmem [shape: f32[8,1], index: 2, kind: input, shape index: {}]   ;;  %s373_s3 = inlined_call_operand.hbm [shape: f32[8,128], index: 3, kind: output, shape index: {}]  }
   0x1   :  { %v15_v0 = vld [vmem:[%s370_s0] sm:$0xff]  ;;  %263 = vset.pattern.permute.xlu0 %v294_v1  ;;  %265 = vset.pattern.permute.xlu1 %v295_v2 }
   0x2   :  { %v31_v3 = vadd.s32 16, %v15_v0 }
   0x3   :  { %8 = vsyncpa [#allocation3], 0  ;;  %19 = vperm.xlu0 %263, %v15_v0   ;;  %v54_v5 = vld [vmem:[%s371_s1] sm:$0x1]  ;;  %v60_v6 = vld [vmem:[%s371_s1 + $0x1] sm:$0x1] }
   0x4   :  { %33 = vperm.xlu1 %265, %v31_v3   ;;  %v24_v7 = vadd.s32 8, %v15_v0  ;;  %v55_v8 = vand.u32 2147483647, %v54_v5  ;;  %v331_v9 = vshrl.u32 %v16_v4, 7  ;;  %v61_v10 = vand.u32 2147483647, %v60_v6 }
   0x5   :  { %v38_v11 = vadd.s32 24, %v15_v0  ;;  %v296_v13 = vmov 1   ;;  %v66_v14 = vld [vmem:[%s371_s1 + $0x2] sm:$0x1]  ;;  %v72_v15 = vld [vmem:[%s371_s1 + $0x3] sm:$0x1] }
   0x6   :  { %v58_v12 = vsub.s32 0, %v331_v9  ;;  %v297_v16 = vmov 3   ;;  %v67_v19 = vand.u32 2147483647, %v66_v14  ;;  %v298_v20 = vmov 0.0|0.0   ;;  %v178_v55 = vld [vmem:[%s372_s2] sm:$0xff] }
   0x7   :  { %264 = vset.pattern.permute.xlu0 %v296_v13  ;;  %249 = vmatprep.subr.bf16.mxu0 %v298_v20  ;;  %v73_v21 = vand.u32 2147483647, %v72_v15  ;;  %vm299_vm0 = vmmov 0   ;;  %v300_v26 = vmov 0.0   ;;  %v17_v27 = vand.u32 127, %v16_v4 }
   0x8   :  { %266 = vset.pattern.permute.xlu1 %v297_v16  ;;  %26 = vperm.xlu0 %264, %v24_v7   ;;  %v59_v17 = vrot.slane %v55_v8, %v58_v12  ;;  %v65_v18 = vrot.slane %v61_v10, %v58_v12  ;;  %v71_v23 = vrot.slane %v67_v19, %v58_v12  ;;  %v228_v38 = vld [vmem:[%s371_s1 + $0x7] ss:$0 sm:$0xff]  ;;  %vm83_vm5 = vcmask 261120   ;;  %v229_v41 = vld [vmem:[%s371_s1 + $0x4] ss:$0 sm:$0xff] }
   0x9   :  { %40 = vperm.xlu1 %266, %v38_v11   ;;  %v77_v24 = vrot.slane %v73_v21, %v58_v12  ;;  %246 = vmatprep.mubr.msk.f32.mxu0 %vm299_vm0, %v300_v26  ;;  %v162_v46 = vld [vmem:[%s371_s1 + $0x5] sm:$0x1]  ;;  %v232_v54 = vld [vmem:[%s371_s1 + $0x6] ss:$0 sm:$0xff]  ;;  %vm181_vm7 = vcmask 7168   ;;  %vm199_vm8 = vcmp.eq.s32.totalorder %v17_v27, 1 }
   0xa   :  { %v250_v22 = vpack.c.bf16 %v65_v18, %v59_v17  ;;  %v163_v47 = vand.u32 2147483647, %v162_v46  ;;  %vm200_vm9 = vcmp.eq.s32.totalorder %v331_v9, 0  ;;  %vm192_vm10 = vcmp.eq.s32.totalorder %v17_v27, 0  ;;  %s301_s1 = smov [#allocation2]  }
   0xb   :  { %v253_v25 = vpack.c.bf16 %v77_v24, %v71_v23  ;;  %vm201_vm11 = vmand %vm199_vm8, %vm200_vm9  ;;  %s216_s2 = sshll.u32 %s301_s1, 4  ;;  %s217_s2 = int_to_ptr.vmem [resolvable:$true] %s216_s2 }
   0xc   :  { %251 = vmatpush3.bf16.msra.mxu0 %v250_v22  ;;  %267 = vset.pattern.permute.xlu0 %v294_v1  ;;  %v168_v49 = vrot.slane %v163_v47, %v58_v12  ;;  %s270_s4 = scalar_lea.vmem %s217_s2, 128  ;;  %p275_p1 = scmp.lt.s32.totalorder %s217_s2, %s217_s2 }
   0xd   :  { %252 = vmatprep.subr.bf16.mxu0 %v298_v20  ;;  %p271_p0 = scmp.ne.s32.totalorder %s217_s2, %s270_s4  ;;  %p276_p2 = scmp.lt.s32.totalorder %s270_s4, %s270_s4 }
   0xf   :  { %p277_p3 = por %p276_p2, %p275_p1 }
  0x10   :  { %254 = vmatpush3.bf16.msra.mxu0 %v253_v25 }
  0x11   :  { %p278_p4 = pnand %p277_p3, %p271_p0 }
  0x82   :  { %v20_v28 = vpop.permute.xlu0 %19 }
  0x83   :  { %v34_v29 = vpop.permute.xlu1 %33  ;;  %vm21_vm1 = vcmp.eq.s32.totalorder %v17_v27, %v20_v28 }
  0x84   :  { %vm35_vm2 = vcmp.eq.s32.totalorder %v17_v27, %v34_v29  ;;  %v224_v32 = vsel %vm21_vm1, 1.0, %v300_v26 }
  0x85   :  { %v226_v34 = vsel %vm35_vm2, 1.0, %v300_v26 }
  0x87   :  { %v27_v30 = vpop.permute.xlu0 %26 }
  0x88   :  { %vm28_vm3 = vcmp.eq.s32.totalorder %v17_v27, %v27_v30  ;;  %v41_v31 = vpop.permute.xlu1 %40 }
  0x89   :  { %v225_v33 = vsel %vm28_vm3, 1.0, %v300_v26  ;;  %vm42_vm4 = vcmp.eq.s32.totalorder %v17_v27, %v41_v31 }
  0x8a   :  { %v45_v35 = vadd.f32 %v225_v33, %v224_v32  ;;  %v227_v36 = vsel %vm42_vm4, 1.0, %v300_v26 }
  0x8b   :  { %v46_v37 = vadd.f32 %v227_v36, %v226_v34 }
  0x8d   :  { %v47_v39 = vadd.f32 %v46_v37, %v45_v35 }
  0x8f   :  { %v53_v40 = vmul.f32 %v228_v38, %v47_v39 }
  0x91   :  { %247 = vmatmul.mubr.msk.f32.vlgmr.msra.gmra.mrb[0].mxu0 %vm83_vm5, %v53_v40 }
 0x164   :  { %v153_v42 = vpop.f32.mrb[0].mxu0 }
 0x165   :  { %v154_v43 = vadd.f32 %v229_v41, %v153_v42  ;;  %v248_v44 = vpop.f32.mrb[1].mxu0 }
 0x167   :  { %v158_v45 = vmul.f32 1.442695, %v154_v43  ;;  %vm157_vm6 = vcmp.gt.f32.partialorder %v154_v43, 0.0 }
 0x169   :  { %268 = vpow2.f32 %v158_v45 }
 0x173   :  { %v269_v48 = vpop.eup %268 }
 0x174   :  { %v231_v50 = vadd.f32 -1.0, %v269_v48 }
 0x176   :  { %v161_v51 = vsel %vm157_vm6, %v154_v43, %v231_v50 }
 0x177   :  { %v169_v52 = vmul.f32 %v168_v49, %v161_v51 }
 0x179   :  { %v170_v53 = vsel %vm83_vm5, %v169_v52, 0.0 }
 0x17a   :  { %171 = vadd.xlane.f32.xlu1 %v170_v53 }
 0x207   :  { %v172_v56 = vpop.xlane.xlu1 %171 }
 0x208   :  { %v177_v57 = vadd.f32 %v232_v54, %v172_v56 }
 0x20a   :  { %v179_v58 = vsub.f32 %v177_v57, %v178_v55  ;;  %195 = vperm.xlu0 %267, %v177_v57  }
 0x20c   :  { %v180_v59 = vmul.f32 %v179_v58, %v179_v58 }
 0x20e   :  { %v182_v60 = vsel %vm181_vm7, %v180_v59, 0.0 }
 0x20f   :  { %v183_v61 = vrot.slane %v182_v60, 4 }
 0x211   :  { %v184_v62 = vadd.f32 %v183_v61, %v182_v60 }
 0x213   :  { %v185_v63 = vrot.slane %v184_v62, 2 }
 0x215   :  { %v186_v0 = vadd.f32 %v185_v63, %v184_v62 }
 0x217   :  { %v187_v1 = vrot.slane %v186_v0, 1 }
 0x219   :  { %v188_v2 = vadd.f32 %v187_v1, %v186_v0 }
 0x21b   :  { %v189_v3 = vmul.f32 0.125, %v188_v2 }
 0x21d   :  { %204 = vperm.xlu0 %267, %v189_v3  }
 0x289   :  { %v196_v4 = vpop.permute.xlu0 %195 }
 0x28a   :  { %v198_v6 = vsel %vm192_vm10, %v196_v4, 0.0 }
 0x29c   :  { %v205_v5 = vpop.permute.xlu0 %204 }
 0x29d   :  { %v207_v7 = vsel %vm201_vm11, %v205_v5, 0.0 }
 0x29e   :  { %v208_v8 = vadd.f32 %v207_v7, %v198_v6 }
 0x2a0   :  { %209 = vst [vmem:[#allocation2] sm:$0xff] %v208_v8 }
 0x2a1   :  { %281 = shalt.err (!%p278_p4)
}
 0x2a2   :  { %s282_s7 = scalar_lea.hbm %s373_s3, 128 }
 0x2a3   :  { %p283_p5 = scmp.ne.s32.totalorder %s373_s3, %s282_s7  ;;  %p286_p6 = scmp.lt.u32.totalorder %s282_s7, %s373_s3 }
 0x2a5   :  { %p288_p7 = pnand %p286_p6, %p283_p5 }
 0x2a7   :  { %291 = shalt.err (!%p288_p7)
}
 0x2a8   :  { %219 = dma.vmem_to_hbm [thread:$0]  %s217_s2, 128, %s373_s3, [#allocation3]  }
 0x2a9   :  { %292 = dma.done.wait [#allocation3], 128  }
 0x2aa   :  { %293 = vsyncadd [#allocation3], 4294967168 }
 0x2ab   :  { %223 = vsyncpa [#allocation3], 1 }

</bundles_post_ra>
